<compile_context>
chip_gen: v6e
topology: v6e:2x2x1
jax: 0.10.0
libtpu: 0.0.40
codegen_flags: <defaults>
</compile_context>

<pallas_src>
import functools

import jax
import jax.numpy as jnp
from jax.experimental import pallas as pl
from jax.experimental.pallas import tpu as pltpu


# ----------------------------------------------------------------------------
# Model configuration
# ----------------------------------------------------------------------------

VOCAB = 100
TYPE_VOCAB = 2
MAX_POS = 64
HIDDEN = 32
N_HEADS = 2
HEAD_DIM = HIDDEN // N_HEADS
FFN = 64
NOISE_SIZE = 16
LN_EPS = 1e-12

# Column offsets inside the (H, 256) "row-major weight" slab.
_OFF_QKV = 0
_OFF_WO = 3 * HIDDEN
_OFF_FF1 = 4 * HIDDEN
_OFF_POOL = 4 * HIDDEN + FFN
_OFF_G2 = 5 * HIDDEN + FFN
_WH_COLS = 6 * HIDDEN + FFN            # 256

# Row offsets inside the (80, H) "column weight" slab.
_ROW_FF2 = 0
_ROW_G1 = FFN                           # 64
_WV_ROWS = FFN + NOISE_SIZE             # 80

# Rows of the (13, 96) bias / layer-norm slab.
_B_EMB_G, _B_EMB_B = 0, 1
_B_QKV = 2
_B_O = 3
_B_ATT_G, _B_ATT_B = 4, 5
_B_FF1 = 6
_B_FF2 = 7
_B_FFN_G, _B_FFN_B = 8, 9
_B_POOL = 10
_B_G1 = 11
_B_G2 = 12
_BIAS_ROWS, _BIAS_COLS = 13, 96


def _mxu_uses_bf16():
    """bf16 MXU operands on v6e/v7x; keep f32 on v5-class chips (no bf16 VPU)."""
    try:
        kind = jax.devices()[0].device_kind.lower()
    except Exception:
        return True
    return "v5" not in kind


# ----------------------------------------------------------------------------
# One fused Pallas kernel: embeddings + encoder layer + pooler + generator.
# Grid = (batch,): each step processes one batch element end-to-end.
# ----------------------------------------------------------------------------

def _gan_bert_kernel(
    wid_ref, tid_ref, mask_ref, noise_ref,          # per-batch inputs
    tab_ref, pos_ref, wh_ref, wv_ref, bias_ref,     # VMEM-resident parameter slabs
    out_ref,                                        # (1, 2, H) output block
    ctx_ref,                                        # (L, H) f32 VMEM scratch
    *, seq, n_heads, head_dim, vocab, type_vocab, noise_size, ffn, eps, use_bf16,
):
    hidden = n_heads * head_dim
    cdt = jnp.bfloat16 if use_bf16 else jnp.float32

    def mm(a, w):
        # MXU matmul, f32 accumulation; operand dtype is generation-dependent.
        return jnp.dot(a.astype(cdt), w.astype(cdt),
                       preferred_element_type=jnp.float32)

    def brow(i, width):
        # Static (1, width) view into the packed bias/LN slab — zero-cost slice.
        return bias_ref[i:i + 1, 0:width]

    def ln(x, g_row, b_row):
        # f32 statistics (v5e VPU/EUP have no bf16 path).
        g = brow(g_row, hidden)
        b = brow(b_row, hidden)
        mu = jnp.mean(x, axis=-1, keepdims=True)
        var = jnp.mean((x - mu) * (x - mu), axis=-1, keepdims=True)
        return (x - mu) * jax.lax.rsqrt(var + eps) * g + b

    # ----- embeddings: one-hot gather on the MXU + positional add + LN -----
    wid = wid_ref[...].reshape(seq, 1)                                   # (L, 1)
    tid = tid_ref[...].reshape(seq, 1) + vocab                           # (L, 1)
    col = jax.lax.broadcasted_iota(jnp.int32, (seq, vocab + type_vocab), 1)
    onehot = jnp.logical_or(col == wid, col == tid).astype(jnp.float32)  # (L, V+T)
    emb = mm(onehot, tab_ref[...]) + pos_ref[0:seq, :]                   # (L, H)
    x = ln(emb, _B_EMB_G, _B_EMB_B)

    # ----- self-attention (fused QKV; Q pre-scaled by 1/sqrt(hd) in the slab) -----
    qkv = mm(x, wh_ref[:, _OFF_QKV:_OFF_QKV + 3 * hidden]) + brow(_B_QKV, 3 * hidden)
    qkv_c = qkv.astype(cdt)                                              # hoisted cast
    add_mask = (1.0 - mask_ref[...].reshape(1, seq)) * -10000.0          # (1, L)

    for h in range(n_heads):
        lo = h * head_dim
        qh = qkv_c[:, lo:lo + head_dim]                                  # (L, hd)
        kh = qkv_c[:, hidden + lo:hidden + lo + head_dim]
        vh = qkv_c[:, 2 * hidden + lo:2 * hidden + lo + head_dim]
        # q @ k^T without an explicit transpose (contract last dims).
        s = jax.lax.dot_general(qh, kh, (((1,), (1,)), ((), ())),
                                preferred_element_type=jnp.float32) + add_mask
        s = s - jnp.max(s, axis=-1, keepdims=True)
        p = jnp.exp(s)
        p = p * pl.reciprocal(jnp.sum(p, axis=-1, keepdims=True), approx=True)
        # Write this head's context into the preallocated scratch (no lane concat).
        ctx_ref[:, lo:lo + head_dim] = jnp.dot(p.astype(cdt), vh,
                                               preferred_element_type=jnp.float32)

    attn_out = mm(ctx_ref[...], wh_ref[:, _OFF_WO:_OFF_WO + hidden]) + brow(_B_O, hidden)
    x = ln(x + attn_out, _B_ATT_G, _B_ATT_B)                             # fused residual

    # ----- feed-forward -----
    # NOTE: tanh-approx GELU; use jax.nn.gelu(..., approximate=False) for exact
    # erf parity with HF BERT if bit-level matching is required.
    ff = jax.nn.gelu(mm(x, wh_ref[:, _OFF_FF1:_OFF_FF1 + ffn]) + brow(_B_FF1, ffn))
    ffn_out = mm(ff, wv_ref[_ROW_FF2:_ROW_FF2 + ffn, :]) + brow(_B_FF2, hidden)
    x = ln(x + ffn_out, _B_FFN_G, _B_FFN_B)                              # (L, H)

    # ----- pooled output == model_out[1]: tanh(Linear(CLS)); CLS = row 0 -----
    pooled = jnp.tanh(mm(x[0:1, :], wh_ref[:, _OFF_POOL:_OFF_POOL + hidden])
                      + brow(_B_POOL, hidden))                           # (1, H)

    # ----- generator(noise): Linear + LeakyReLU(0.2) + Linear -----
    # TODO(synk): generator Dropout is a no-op in eval mode; not applied here.
    nz = noise_ref[...].reshape(1, noise_size)
    g = mm(nz, wv_ref[_ROW_G1:_ROW_G1 + noise_size, :]) + brow(_B_G1, hidden)
    g = jnp.where(g > 0, g, 0.2 * g)
    gen_rep = mm(g, wh_ref[:, _OFF_G2:_OFF_G2 + hidden]) + brow(_B_G2, hidden)

    # ----- direct half writes (no concatenate before the store) -----
    out_ref[:, 0:1, :] = pooled.reshape(1, 1, hidden).astype(out_ref.dtype)
    out_ref[:, 1:2, :] = gen_rep.reshape(1, 1, hidden).astype(out_ref.dtype)


# ----------------------------------------------------------------------------
# Parameters (deterministic init) and host-side packing into DMA slabs
# ----------------------------------------------------------------------------

def init_params(key):
    def nrm(k, shape, scale=0.02):
        return scale * jax.random.normal(k, shape, dtype=jnp.float32)

    ks = jax.random.split(key, 12)
    H = HIDDEN
    return {
        # embeddings
        "word_emb": nrm(ks[0], (VOCAB, H)),
        "pos_emb": nrm(ks[1], (MAX_POS, H)),
        "type_emb": nrm(ks[2], (TYPE_VOCAB, H)),
        "emb_ln_g": jnp.ones((1, H), jnp.float32),
        "emb_ln_b": jnp.zeros((1, H), jnp.float32),
        # one encoder layer (QKV fused)
        "wqkv": nrm(ks[3], (H, 3 * H)), "bqkv": jnp.zeros((1, 3 * H), jnp.float32),
        "wo": nrm(ks[4], (H, H)), "bo": jnp.zeros((1, H), jnp.float32),
        "attn_ln_g": jnp.ones((1, H), jnp.float32),
        "attn_ln_b": jnp.zeros((1, H), jnp.float32),
        "w_ff1": nrm(ks[5], (H, FFN)), "b_ff1": jnp.zeros((1, FFN), jnp.float32),
        "w_ff2": nrm(ks[6], (FFN, H)), "b_ff2": jnp.zeros((1, H), jnp.float32),
        "ffn_ln_g": jnp.ones((1, H), jnp.float32),
        "ffn_ln_b": jnp.zeros((1, H), jnp.float32),
        # pooler
        "w_pool": nrm(ks[7], (H, H)), "b_pool": jnp.zeros((1, H), jnp.float32),
        # generator
        "w_g1": nrm(ks[8], (NOISE_SIZE, H)), "b_g1": jnp.zeros((1, H), jnp.float32),
        "w_g2": nrm(ks[9], (H, H)), "b_g2": jnp.zeros((1, H), jnp.float32),
    }


def pack_params(params):
    """Pack all parameters into 3 contiguous slabs (+ 2 embedding tables).

    Call once, OUTSIDE jit, so the jitted graph is just reshapes + one pallas_call.
    The 1/sqrt(head_dim) attention scale is folded into the Q columns/bias here.
    """
    H = HIDDEN
    scale = 1.0 / (HEAD_DIM ** 0.5)

    wqkv = params["wqkv"].at[:, :H].multiply(scale)      # pre-scale Q weights
    bqkv = params["bqkv"].at[:, :H].multiply(scale)      # pre-scale Q bias

    w_h = jnp.concatenate(
        [wqkv, params["wo"], params["w_ff1"], params["w_pool"], params["w_g2"]],
        axis=1)                                          # (H, 256)
    assert w_h.shape == (H, _WH_COLS)

    w_v = jnp.concatenate([params["w_ff2"], params["w_g1"]], axis=0)   # (80, H)
    assert w_v.shape == (_WV_ROWS, H)

    def pad_row(v):
        return jnp.pad(v, ((0, 0), (0, _BIAS_COLS - v.shape[1])))

    bias = jnp.concatenate([pad_row(v) for v in (
        params["emb_ln_g"], params["emb_ln_b"],
        bqkv, params["bo"],
        params["attn_ln_g"], params["attn_ln_b"],
        params["b_ff1"], params["b_ff2"],
        params["ffn_ln_g"], params["ffn_ln_b"],
        params["b_pool"], params["b_g1"], params["b_g2"],
    )], axis=0)                                           # (13, 96)
    assert bias.shape == (_BIAS_ROWS, _BIAS_COLS)

    emb_tables = jnp.concatenate(
        [params["word_emb"], params["type_emb"]], axis=0)  # (V + T, H)

    return {
        "emb_tables": emb_tables,
        "pos_emb": params["pos_emb"],
        "w_h": w_h,
        "w_v": w_v,
        "bias": bias,
    }


# ----------------------------------------------------------------------------
# Forward pass (mirrors GANBert.forward)
# ----------------------------------------------------------------------------

def gan_bert_forward(packed, input_ids, attention_mask, token_type_ids, noise,
                     labels=None):
    B, L = input_ids.shape
    H = HIDDEN

    # Per-batch activations reshaped so every block's last-two dims equal the
    # full array dims (no (8,128) divisibility concerns).
    wid = input_ids.astype(jnp.int32).reshape(B, L, 1)
    tid = token_type_ids.astype(jnp.int32).reshape(B, L, 1)
    mask_f = attention_mask.astype(jnp.float32).reshape(B, 1, L)
    noise_f = noise.astype(jnp.float32).reshape(B, 1, NOISE_SIZE)

    args = (wid, tid, mask_f, noise_f,
            packed["emb_tables"], packed["pos_emb"],
            packed["w_h"], packed["w_v"], packed["bias"])

    def const_spec(arr):
        zeros = (0,) * arr.ndim
        return pl.BlockSpec(arr.shape, lambda b, _z=zeros: _z)

    in_specs = [
        pl.BlockSpec((1, L, 1), lambda b: (b, 0, 0)),           # word ids
        pl.BlockSpec((1, L, 1), lambda b: (b, 0, 0)),           # type ids
        pl.BlockSpec((1, 1, L), lambda b: (b, 0, 0)),           # attention mask
        pl.BlockSpec((1, 1, NOISE_SIZE), lambda b: (b, 0, 0)),  # generator noise
        const_spec(packed["emb_tables"]),                       # weight slabs stay
        const_spec(packed["pos_emb"]),                          # VMEM-resident across
        const_spec(packed["w_h"]),                              # the batch grid
        const_spec(packed["w_v"]),
        const_spec(packed["bias"]),
    ]

    use_bf16 = _mxu_uses_bf16()
    kernel = functools.partial(
        _gan_bert_kernel,
        seq=L, n_heads=N_HEADS, head_dim=HEAD_DIM, vocab=VOCAB,
        type_vocab=TYPE_VOCAB, noise_size=NOISE_SIZE, ffn=FFN, eps=LN_EPS,
        use_bf16=use_bf16)

    # Advisory cost estimate so XLA can overlap the custom call with glue HLO.
    flops = B * (
        2 * L * (VOCAB + TYPE_VOCAB) * H            # embedding one-hot matmul
        + 2 * L * H * 3 * H                         # QKV
        + N_HEADS * (2 * L * L * HEAD_DIM) * 2      # scores + context
        + 2 * L * H * H                             # output proj
        + 2 * L * H * FFN * 2                       # FFN
        + 2 * H * H                                 # pooler
        + 2 * NOISE_SIZE * H + 2 * H * H)           # generator
    transcendentals = B * (L * FFN + N_HEADS * L * L + H)
    bytes_accessed = int(sum(a.size * a.dtype.itemsize for a in args)
                         + B * 2 * H * 4)

    out = pl.pallas_call(
        kernel,
        out_shape=jax.ShapeDtypeStruct((B, 2, H), jnp.float32),
        grid=(B,),
        in_specs=in_specs,
        out_specs=pl.BlockSpec((1, 2, H), lambda b: (b, 0, 0)),
        scratch_shapes=[pltpu.VMEM((L, H), jnp.float32)],       # per-head ctx slab
        compiler_params=pltpu.CompilerParams(
            dimension_semantics=("parallel",)),                 # v7x: 2 TCs split batch
        cost_estimate=pl.CostEstimate(
            flops=int(flops), transcendentals=int(transcendentals),
            bytes_accessed=bytes_accessed),
    )(*args)

    # disc_input = cat([hidden_states, gen_rep], dim=0)
    disc_input = jnp.swapaxes(out, 0, 1).reshape(2 * B, H)

    # TODO(synk): source forward ends here (no discriminator call / return statement).
    return disc_input


# ----------------------------------------------------------------------------
# Main
# ----------------------------------------------------------------------------

if __name__ == "__main__":
    key = jax.random.PRNGKey(0)
    k_param, k_ids, k_noise = jax.random.split(key, 3)

    B, L = 2, 8
    params = init_params(k_param)
    packed = pack_params(params)   # one-time host-side packing (outside jit)

    input_ids = jax.random.randint(k_ids, (B, L), 0, VOCAB, dtype=jnp.int32)
    attention_mask = jnp.ones((B, L), dtype=jnp.int32)
    token_type_ids = jnp.zeros((B, L), dtype=jnp.int32)
    # PyTorch source draws uniform(0,1) noise inside forward; we pass it explicitly.
    noise = jax.random.uniform(k_noise, (B, NOISE_SIZE), dtype=jnp.float32)

    fwd = jax.jit(gan_bert_forward)
    out = fwd(packed, input_ids, attention_mask, token_type_ids, noise)
    out = jax.block_until_ready(out)

    assert out.shape == (2 * B, HIDDEN), out.shape
    assert bool(jnp.all(jnp.isfinite(out)))
    print("KERNEL_OK")
</pallas_src>

<mosaic_0001>
module attributes {stable_mosaic.version = 11 : i64} {
  func.func @_gan_bert_kernel(%arg0: i32, %arg1: memref<1x8x1xi32, #tpu.memory_space<vmem>>, %arg2: memref<1x8x1xi32, #tpu.memory_space<vmem>>, %arg3: memref<1x1x8xf32, #tpu.memory_space<vmem>>, %arg4: memref<1x1x16xf32, #tpu.memory_space<vmem>>, %arg5: memref<102x32xf32, #tpu.memory_space<vmem>>, %arg6: memref<64x32xf32, #tpu.memory_space<vmem>>, %arg7: memref<32x256xf32, #tpu.memory_space<vmem>>, %arg8: memref<80x32xf32, #tpu.memory_space<vmem>>, %arg9: memref<13x96xf32, #tpu.memory_space<vmem>>, %arg10: memref<1x2x32xf32, #tpu.memory_space<vmem>>, %arg11: memref<8x32xf32, #tpu.memory_space<vmem>>) attributes {dimension_semantics = [#tpu.dimension_semantics<parallel>], iteration_bounds = array<i64: 2>, scalar_prefetch = 0 : i64, scratch_operands = 1 : i64, tpu.core_type = #tpu.core_type<tc>, window_params = [{transform_indices = @transform_0, window_bounds = array<i64: 1, 8, 1>}, {transform_indices = @transform_1, window_bounds = array<i64: 1, 8, 1>}, {transform_indices = @transform_2, window_bounds = array<i64: 1, 1, 8>}, {transform_indices = @transform_3, window_bounds = array<i64: 1, 1, 16>}, {pipeline_mode = #tpu.pipeline_mode<synchronous>, transform_indices = @transform_4, window_bounds = array<i64: 102, 32>}, {pipeline_mode = #tpu.pipeline_mode<synchronous>, transform_indices = @transform_5, window_bounds = array<i64: 64, 32>}, {pipeline_mode = #tpu.pipeline_mode<synchronous>, transform_indices = @transform_6, window_bounds = array<i64: 32, 256>}, {pipeline_mode = #tpu.pipeline_mode<synchronous>, transform_indices = @transform_7, window_bounds = array<i64: 80, 32>}, {pipeline_mode = #tpu.pipeline_mode<synchronous>, transform_indices = @transform_8, window_bounds = array<i64: 13, 96>}, {transform_indices = @transform_9, window_bounds = array<i64: 1, 2, 32>}]} {
    %c0 = arith.constant 0 : index
    %c0_0 = arith.constant 0 : index
    %c0_1 = arith.constant 0 : index
    %0 = vector.load %arg1[%c0, %c0_0, %c0_1] : memref<1x8x1xi32, #tpu.memory_space<vmem>>, vector<1x8x1xi32>
    %1 = vector.shape_cast %0 : vector<1x8x1xi32> to vector<8x1xi32>
    %c0_2 = arith.constant 0 : index
    %c0_3 = arith.constant 0 : index
    %c0_4 = arith.constant 0 : index
    %2 = vector.load %arg2[%c0_2, %c0_3, %c0_4] : memref<1x8x1xi32, #tpu.memory_space<vmem>>, vector<1x8x1xi32>
    %3 = vector.shape_cast %2 : vector<1x8x1xi32> to vector<8x1xi32>
    %c100_i32 = arith.constant 100 : i32
    %4 = vector.broadcast %c100_i32 : i32 to vector<8x1xi32>
    %5 = arith.addi %3, %4 : vector<8x1xi32>
    %6 = tpu.iota {dimensions = array<i32: 1>} : vector<8x102xi32>
    %7 = vector.broadcast %1 : vector<8x1xi32> to vector<8x102xi32>
    %8 = arith.cmpi eq, %6, %7 : vector<8x102xi32>
    %9 = vector.broadcast %5 : vector<8x1xi32> to vector<8x102xi32>
    %10 = arith.cmpi eq, %6, %9 : vector<8x102xi32>
    %11 = arith.ori %8, %10 : vector<8x102xi1>
    %12 = arith.extui %11 : vector<8x102xi1> to vector<8x102xi32>
    %13 = arith.sitofp %12 : vector<8x102xi32> to vector<8x102xf32>
    %c0_5 = arith.constant 0 : index
    %c0_6 = arith.constant 0 : index
    %14 = vector.load %arg5[%c0_5, %c0_6] : memref<102x32xf32, #tpu.memory_space<vmem>>, vector<102x32xf32>
    %15 = arith.truncf %13 : vector<8x102xf32> to vector<8x102xbf16>
    %16 = arith.truncf %14 : vector<102x32xf32> to vector<102x32xbf16>
    %cst = arith.constant dense<0.000000e+00> : vector<8x32xf32>
    %17 = tpu.matmul %15, %16, %cst {dimension_numbers = #tpu.dot_dimension_numbers<[1], [0], [0], [1], [0, 0, 1, 1], [], []>} : vector<8x102xbf16>, vector<102x32xbf16>, vector<8x32xf32> -> vector<8x32xf32>
    %c0_7 = arith.constant 0 : index
    %c0_8 = arith.constant 0 : index
    %18 = vector.load %arg6[%c0_7, %c0_8] : memref<64x32xf32, #tpu.memory_space<vmem>>, vector<8x32xf32>
    %19 = arith.addf %17, %18 : vector<8x32xf32>
    %c0_9 = arith.constant 0 : index
    %c0_10 = arith.constant 0 : index
    %20 = vector.load %arg9[%c0_9, %c0_10] : memref<13x96xf32, #tpu.memory_space<vmem>>, vector<1x32xf32>
    %c1 = arith.constant 1 : index
    %c0_11 = arith.constant 0 : index
    %21 = vector.load %arg9[%c1, %c0_11] : memref<13x96xf32, #tpu.memory_space<vmem>>, vector<1x32xf32>
    %cst_12 = arith.constant dense<0.000000e+00> : vector<8xf32>
    %22 = vector.multi_reduction <add>, %19, %cst_12 [1] : vector<8x32xf32> to vector<8xf32>
    %23 = vector.shape_cast %22 : vector<8xf32> to vector<8x1xf32>
    %cst_13 = arith.constant 3.200000e+01 : f32
    %24 = vector.broadcast %cst_13 : f32 to vector<8x1xf32>
    %25 = arith.divf %23, %24 : vector<8x1xf32>
    %26 = vector.broadcast %25 : vector<8x1xf32> to vector<8x32xf32>
    %27 = arith.subf %19, %26 : vector<8x32xf32>
    %28 = vector.broadcast %25 : vector<8x1xf32> to vector<8x32xf32>
    %29 = arith.subf %19, %28 : vector<8x32xf32>
    %30 = arith.mulf %27, %29 : vector<8x32xf32>
    %cst_14 = arith.constant dense<0.000000e+00> : vector<8xf32>
    %31 = vector.multi_reduction <add>, %30, %cst_14 [1] : vector<8x32xf32> to vector<8xf32>
    %32 = vector.shape_cast %31 : vector<8xf32> to vector<8x1xf32>
    %cst_15 = arith.constant 3.200000e+01 : f32
    %33 = vector.broadcast %cst_15 : f32 to vector<8x1xf32>
    %34 = arith.divf %32, %33 : vector<8x1xf32>
    %35 = vector.broadcast %25 : vector<8x1xf32> to vector<8x32xf32>
    %36 = arith.subf %19, %35 : vector<8x32xf32>
    %cst_16 = arith.constant 9.99999996E-13 : f32
    %37 = vector.broadcast %cst_16 : f32 to vector<8x1xf32>
    %38 = arith.addf %34, %37 : vector<8x1xf32>
    %39 = math.rsqrt %38 : vector<8x1xf32>
    %40 = vector.broadcast %39 : vector<8x1xf32> to vector<8x32xf32>
    %41 = arith.mulf %36, %40 : vector<8x32xf32>
    %42 = vector.broadcast %20 : vector<1x32xf32> to vector<8x32xf32>
    %43 = arith.mulf %41, %42 : vector<8x32xf32>
    %44 = vector.broadcast %21 : vector<1x32xf32> to vector<8x32xf32>
    %45 = arith.addf %43, %44 : vector<8x32xf32>
    %c0_17 = arith.constant 0 : index
    %c0_18 = arith.constant 0 : index
    %46 = vector.load %arg7[%c0_17, %c0_18] : memref<32x256xf32, #tpu.memory_space<vmem>>, vector<32x96xf32>
    %47 = arith.truncf %45 : vector<8x32xf32> to vector<8x32xbf16>
    %48 = arith.truncf %46 : vector<32x96xf32> to vector<32x96xbf16>
    %cst_19 = arith.constant dense<0.000000e+00> : vector<8x96xf32>
    %49 = tpu.matmul %47, %48, %cst_19 {dimension_numbers = #tpu.dot_dimension_numbers<[1], [0], [0], [1], [0, 0, 1, 1], [], []>} : vector<8x32xbf16>, vector<32x96xbf16>, vector<8x96xf32> -> vector<8x96xf32>
    %c2 = arith.constant 2 : index
    %c0_20 = arith.constant 0 : index
    %50 = vector.load %arg9[%c2, %c0_20] : memref<13x96xf32, #tpu.memory_space<vmem>>, vector<1x96xf32>
    %51 = vector.broadcast %50 : vector<1x96xf32> to vector<8x96xf32>
    %52 = arith.addf %49, %51 : vector<8x96xf32>
    %53 = arith.truncf %52 : vector<8x96xf32> to vector<8x96xbf16>
    %c0_21 = arith.constant 0 : index
    %c0_22 = arith.constant 0 : index
    %c0_23 = arith.constant 0 : index
    %54 = vector.load %arg3[%c0_21, %c0_22, %c0_23] : memref<1x1x8xf32, #tpu.memory_space<vmem>>, vector<1x1x8xf32>
    %55 = vector.shape_cast %54 : vector<1x1x8xf32> to vector<1x8xf32>
    %cst_24 = arith.constant 1.000000e+00 : f32
    %56 = vector.broadcast %cst_24 : f32 to vector<1x8xf32>
    %57 = arith.subf %56, %55 : vector<1x8xf32>
    %cst_25 = arith.constant -1.000000e+04 : f32
    %58 = vector.broadcast %cst_25 : f32 to vector<1x8xf32>
    %59 = arith.mulf %57, %58 : vector<1x8xf32>
    %60 = vector.extract_strided_slice %53 {offsets = [0, 0], sizes = [8, 16], strides = [1, 1]} : vector<8x96xbf16> to vector<8x16xbf16>
    %61 = vector.extract_strided_slice %53 {offsets = [0, 32], sizes = [8, 16], strides = [1, 1]} : vector<8x96xbf16> to vector<8x16xbf16>
    %62 = vector.extract_strided_slice %53 {offsets = [0, 64], sizes = [8, 16], strides = [1, 1]} : vector<8x96xbf16> to vector<8x16xbf16>
    %cst_26 = arith.constant dense<0.000000e+00> : vector<8x8xf32>
    %63 = tpu.matmul %60, %61, %cst_26 {dimension_numbers = #tpu.dot_dimension_numbers<[1], [1], [0], [0], [0, 0, 1, 0], [], []>} : vector<8x16xbf16>, vector<8x16xbf16>, vector<8x8xf32> -> vector<8x8xf32>
    %64 = vector.broadcast %59 : vector<1x8xf32> to vector<8x8xf32>
    %65 = arith.addf %63, %64 : vector<8x8xf32>
    %cst_27 = arith.constant dense<0xFF800000> : vector<8xf32>
    %66 = vector.multi_reduction <maximumf>, %65, %cst_27 [1] : vector<8x8xf32> to vector<8xf32>
    %67 = vector.shape_cast %66 : vector<8xf32> to vector<8x1xf32>
    %68 = vector.broadcast %67 : vector<8x1xf32> to vector<8x8xf32>
    %69 = arith.subf %65, %68 : vector<8x8xf32>
    %70 = math.exp %69 : vector<8x8xf32>
    %cst_28 = arith.constant dense<0.000000e+00> : vector<8xf32>
    %71 = vector.multi_reduction <add>, %70, %cst_28 [1] : vector<8x8xf32> to vector<8xf32>
    %72 = vector.shape_cast %71 : vector<8xf32> to vector<8x1xf32>
    %73 = tpu.reciprocal %72 {approx = true} : vector<8x1xf32> -> vector<8x1xf32>
    %74 = vector.broadcast %73 : vector<8x1xf32> to vector<8x8xf32>
    %75 = arith.mulf %70, %74 : vector<8x8xf32>
    %76 = arith.truncf %75 : vector<8x8xf32> to vector<8x8xbf16>
    %cst_29 = arith.constant dense<0.000000e+00> : vector<8x16xf32>
    %77 = tpu.matmul %76, %62, %cst_29 {dimension_numbers = #tpu.dot_dimension_numbers<[1], [0], [0], [1], [0, 0, 1, 1], [], []>} : vector<8x8xbf16>, vector<8x16xbf16>, vector<8x16xf32> -> vector<8x16xf32>
    %c0_30 = arith.constant 0 : index
    %c0_31 = arith.constant 0 : index
    %78 = vector.load %arg11[%c0_30, %c0_31] : memref<8x32xf32, #tpu.memory_space<vmem>>, vector<8x16xf32>
    tpu.vector_store %arg11[%c0_30, %c0_31], %77 {strides = array<i32>} : memref<8x32xf32, #tpu.memory_space<vmem>>, vector<8x16xf32>,
    %79 = vector.extract_strided_slice %53 {offsets = [0, 16], sizes = [8, 16], strides = [1, 1]} : vector<8x96xbf16> to vector<8x16xbf16>
    %80 = vector.extract_strided_slice %53 {offsets = [0, 48], sizes = [8, 16], strides = [1, 1]} : vector<8x96xbf16> to vector<8x16xbf16>
    %81 = vector.extract_strided_slice %53 {offsets = [0, 80], sizes = [8, 16], strides = [1, 1]} : vector<8x96xbf16> to vector<8x16xbf16>
    %cst_32 = arith.constant dense<0.000000e+00> : vector<8x8xf32>
    %82 = tpu.matmul %79, %80, %cst_32 {dimension_numbers = #tpu.dot_dimension_numbers<[1], [1], [0], [0], [0, 0, 1, 0], [], []>} : vector<8x16xbf16>, vector<8x16xbf16>, vector<8x8xf32> -> vector<8x8xf32>
    %83 = vector.broadcast %59 : vector<1x8xf32> to vector<8x8xf32>
    %84 = arith.addf %82, %83 : vector<8x8xf32>
    %cst_33 = arith.constant dense<0xFF800000> : vector<8xf32>
    %85 = vector.multi_reduction <maximumf>, %84, %cst_33 [1] : vector<8x8xf32> to vector<8xf32>
    %86 = vector.shape_cast %85 : vector<8xf32> to vector<8x1xf32>
    %87 = vector.broadcast %86 : vector<8x1xf32> to vector<8x8xf32>
    %88 = arith.subf %84, %87 : vector<8x8xf32>
    %89 = math.exp %88 : vector<8x8xf32>
    %cst_34 = arith.constant dense<0.000000e+00> : vector<8xf32>
    %90 = vector.multi_reduction <add>, %89, %cst_34 [1] : vector<8x8xf32> to vector<8xf32>
    %91 = vector.shape_cast %90 : vector<8xf32> to vector<8x1xf32>
    %92 = tpu.reciprocal %91 {approx = true} : vector<8x1xf32> -> vector<8x1xf32>
    %93 = vector.broadcast %92 : vector<8x1xf32> to vector<8x8xf32>
    %94 = arith.mulf %89, %93 : vector<8x8xf32>
    %95 = arith.truncf %94 : vector<8x8xf32> to vector<8x8xbf16>
    %cst_35 = arith.constant dense<0.000000e+00> : vector<8x16xf32>
    %96 = tpu.matmul %95, %81, %cst_35 {dimension_numbers = #tpu.dot_dimension_numbers<[1], [0], [0], [1], [0, 0, 1, 1], [], []>} : vector<8x8xbf16>, vector<8x16xbf16>, vector<8x16xf32> -> vector<8x16xf32>
    %c0_36 = arith.constant 0 : index
    %c16 = arith.constant 16 : index
    %97 = vector.load %arg11[%c0_36, %c16] : memref<8x32xf32, #tpu.memory_space<vmem>>, vector<8x16xf32>
    tpu.vector_store %arg11[%c0_36, %c16], %96 {strides = array<i32>} : memref<8x32xf32, #tpu.memory_space<vmem>>, vector<8x16xf32>,
    %c0_37 = arith.constant 0 : index
    %c0_38 = arith.constant 0 : index
    %98 = vector.load %arg11[%c0_37, %c0_38] : memref<8x32xf32, #tpu.memory_space<vmem>>, vector<8x32xf32>
    %c0_39 = arith.constant 0 : index
    %c96 = arith.constant 96 : index
    %99 = vector.load %arg7[%c0_39, %c96] : memref<32x256xf32, #tpu.memory_space<vmem>>, vector<32x32xf32>
    %100 = arith.truncf %98 : vector<8x32xf32> to vector<8x32xbf16>
    %101 = arith.truncf %99 : vector<32x32xf32> to vector<32x32xbf16>
    %cst_40 = arith.constant dense<0.000000e+00> : vector<8x32xf32>
    %102 = tpu.matmul %100, %101, %cst_40 {dimension_numbers = #tpu.dot_dimension_numbers<[1], [0], [0], [1], [0, 0, 1, 1], [], []>} : vector<8x32xbf16>, vector<32x32xbf16>, vector<8x32xf32> -> vector<8x32xf32>
    %c3 = arith.constant 3 : index
    %c0_41 = arith.constant 0 : index
    %103 = vector.load %arg9[%c3, %c0_41] : memref<13x96xf32, #tpu.memory_space<vmem>>, vector<1x32xf32>
    %104 = vector.broadcast %103 : vector<1x32xf32> to vector<8x32xf32>
    %105 = arith.addf %102, %104 : vector<8x32xf32>
    %106 = arith.addf %45, %105 : vector<8x32xf32>
    %c4 = arith.constant 4 : index
    %c0_42 = arith.constant 0 : index
    %107 = vector.load %arg9[%c4, %c0_42] : memref<13x96xf32, #tpu.memory_space<vmem>>, vector<1x32xf32>
    %c5 = arith.constant 5 : index
    %c0_43 = arith.constant 0 : index
    %108 = vector.load %arg9[%c5, %c0_43] : memref<13x96xf32, #tpu.memory_space<vmem>>, vector<1x32xf32>
    %cst_44 = arith.constant dense<0.000000e+00> : vector<8xf32>
    %109 = vector.multi_reduction <add>, %106, %cst_44 [1] : vector<8x32xf32> to vector<8xf32>
    %110 = vector.shape_cast %109 : vector<8xf32> to vector<8x1xf32>
    %cst_45 = arith.constant 3.200000e+01 : f32
    %111 = vector.broadcast %cst_45 : f32 to vector<8x1xf32>
    %112 = arith.divf %110, %111 : vector<8x1xf32>
    %113 = vector.broadcast %112 : vector<8x1xf32> to vector<8x32xf32>
    %114 = arith.subf %106, %113 : vector<8x32xf32>
    %115 = vector.broadcast %112 : vector<8x1xf32> to vector<8x32xf32>
    %116 = arith.subf %106, %115 : vector<8x32xf32>
    %117 = arith.mulf %114, %116 : vector<8x32xf32>
    %cst_46 = arith.constant dense<0.000000e+00> : vector<8xf32>
    %118 = vector.multi_reduction <add>, %117, %cst_46 [1] : vector<8x32xf32> to vector<8xf32>
    %119 = vector.shape_cast %118 : vector<8xf32> to vector<8x1xf32>
    %cst_47 = arith.constant 3.200000e+01 : f32
    %120 = vector.broadcast %cst_47 : f32 to vector<8x1xf32>
    %121 = arith.divf %119, %120 : vector<8x1xf32>
    %122 = vector.broadcast %112 : vector<8x1xf32> to vector<8x32xf32>
    %123 = arith.subf %106, %122 : vector<8x32xf32>
    %cst_48 = arith.constant 9.99999996E-13 : f32
    %124 = vector.broadcast %cst_48 : f32 to vector<8x1xf32>
    %125 = arith.addf %121, %124 : vector<8x1xf32>
    %126 = math.rsqrt %125 : vector<8x1xf32>
    %127 = vector.broadcast %126 : vector<8x1xf32> to vector<8x32xf32>
    %128 = arith.mulf %123, %127 : vector<8x32xf32>
    %129 = vector.broadcast %107 : vector<1x32xf32> to vector<8x32xf32>
    %130 = arith.mulf %128, %129 : vector<8x32xf32>
    %131 = vector.broadcast %108 : vector<1x32xf32> to vector<8x32xf32>
    %132 = arith.addf %130, %131 : vector<8x32xf32>
    %c0_49 = arith.constant 0 : index
    %c128 = arith.constant 128 : index
    %133 = vector.load %arg7[%c0_49, %c128] : memref<32x256xf32, #tpu.memory_space<vmem>>, vector<32x64xf32>
    %134 = arith.truncf %132 : vector<8x32xf32> to vector<8x32xbf16>
    %135 = arith.truncf %133 : vector<32x64xf32> to vector<32x64xbf16>
    %cst_50 = arith.constant dense<0.000000e+00> : vector<8x64xf32>
    %136 = tpu.matmul %134, %135, %cst_50 {dimension_numbers = #tpu.dot_dimension_numbers<[1], [0], [0], [1], [0, 0, 1, 1], [], []>} : vector<8x32xbf16>, vector<32x64xbf16>, vector<8x64xf32> -> vector<8x64xf32>
    %c6 = arith.constant 6 : index
    %c0_51 = arith.constant 0 : index
    %137 = vector.load %arg9[%c6, %c0_51] : memref<13x96xf32, #tpu.memory_space<vmem>>, vector<1x64xf32>
    %138 = vector.broadcast %137 : vector<1x64xf32> to vector<8x64xf32>
    %139 = arith.addf %136, %138 : vector<8x64xf32>
    %140 = arith.mulf %139, %139 : vector<8x64xf32>
    %141 = arith.mulf %139, %140 : vector<8x64xf32>
    %cst_52 = arith.constant 4.471500e-02 : f32
    %142 = vector.broadcast %cst_52 : f32 to vector<8x64xf32>
    %143 = arith.mulf %142, %141 : vector<8x64xf32>
    %144 = arith.addf %139, %143 : vector<8x64xf32>
    %cst_53 = arith.constant 0.797884583 : f32
    %145 = vector.broadcast %cst_53 : f32 to vector<8x64xf32>
    %146 = arith.mulf %145, %144 : vector<8x64xf32>
    %147 = math.tanh %146 : vector<8x64xf32>
    %cst_54 = arith.constant 1.000000e+00 : f32
    %148 = vector.broadcast %cst_54 : f32 to vector<8x64xf32>
    %149 = arith.addf %148, %147 : vector<8x64xf32>
    %cst_55 = arith.constant 5.000000e-01 : f32
    %150 = vector.broadcast %cst_55 : f32 to vector<8x64xf32>
    %151 = arith.mulf %150, %149 : vector<8x64xf32>
    %152 = arith.mulf %139, %151 : vector<8x64xf32>
    %c0_56 = arith.constant 0 : index
    %c0_57 = arith.constant 0 : index
    %153 = vector.load %arg8[%c0_56, %c0_57] : memref<80x32xf32, #tpu.memory_space<vmem>>, vector<64x32xf32>
    %154 = arith.truncf %152 : vector<8x64xf32> to vector<8x64xbf16>
    %155 = arith.truncf %153 : vector<64x32xf32> to vector<64x32xbf16>
    %cst_58 = arith.constant dense<0.000000e+00> : vector<8x32xf32>
    %156 = tpu.matmul %154, %155, %cst_58 {dimension_numbers = #tpu.dot_dimension_numbers<[1], [0], [0], [1], [0, 0, 1, 1], [], []>} : vector<8x64xbf16>, vector<64x32xbf16>, vector<8x32xf32> -> vector<8x32xf32>
    %c7 = arith.constant 7 : index
    %c0_59 = arith.constant 0 : index
    %157 = vector.load %arg9[%c7, %c0_59] : memref<13x96xf32, #tpu.memory_space<vmem>>, vector<1x32xf32>
    %158 = vector.broadcast %157 : vector<1x32xf32> to vector<8x32xf32>
    %159 = arith.addf %156, %158 : vector<8x32xf32>
    %160 = arith.addf %132, %159 : vector<8x32xf32>
    %c8 = arith.constant 8 : index
    %c0_60 = arith.constant 0 : index
    %161 = vector.load %arg9[%c8, %c0_60] : memref<13x96xf32, #tpu.memory_space<vmem>>, vector<1x32xf32>
    %c9 = arith.constant 9 : index
    %c0_61 = arith.constant 0 : index
    %162 = vector.load %arg9[%c9, %c0_61] : memref<13x96xf32, #tpu.memory_space<vmem>>, vector<1x32xf32>
    %cst_62 = arith.constant dense<0.000000e+00> : vector<8xf32>
    %163 = vector.multi_reduction <add>, %160, %cst_62 [1] : vector<8x32xf32> to vector<8xf32>
    %164 = vector.shape_cast %163 : vector<8xf32> to vector<8x1xf32>
    %cst_63 = arith.constant 3.200000e+01 : f32
    %165 = vector.broadcast %cst_63 : f32 to vector<8x1xf32>
    %166 = arith.divf %164, %165 : vector<8x1xf32>
    %167 = vector.broadcast %166 : vector<8x1xf32> to vector<8x32xf32>
    %168 = arith.subf %160, %167 : vector<8x32xf32>
    %169 = vector.broadcast %166 : vector<8x1xf32> to vector<8x32xf32>
    %170 = arith.subf %160, %169 : vector<8x32xf32>
    %171 = arith.mulf %168, %170 : vector<8x32xf32>
    %cst_64 = arith.constant dense<0.000000e+00> : vector<8xf32>
    %172 = vector.multi_reduction <add>, %171, %cst_64 [1] : vector<8x32xf32> to vector<8xf32>
    %173 = vector.shape_cast %172 : vector<8xf32> to vector<8x1xf32>
    %cst_65 = arith.constant 3.200000e+01 : f32
    %174 = vector.broadcast %cst_65 : f32 to vector<8x1xf32>
    %175 = arith.divf %173, %174 : vector<8x1xf32>
    %176 = vector.broadcast %166 : vector<8x1xf32> to vector<8x32xf32>
    %177 = arith.subf %160, %176 : vector<8x32xf32>
    %cst_66 = arith.constant 9.99999996E-13 : f32
    %178 = vector.broadcast %cst_66 : f32 to vector<8x1xf32>
    %179 = arith.addf %175, %178 : vector<8x1xf32>
    %180 = math.rsqrt %179 : vector<8x1xf32>
    %181 = vector.broadcast %180 : vector<8x1xf32> to vector<8x32xf32>
    %182 = arith.mulf %177, %181 : vector<8x32xf32>
    %183 = vector.broadcast %161 : vector<1x32xf32> to vector<8x32xf32>
    %184 = arith.mulf %182, %183 : vector<8x32xf32>
    %185 = vector.broadcast %162 : vector<1x32xf32> to vector<8x32xf32>
    %186 = arith.addf %184, %185 : vector<8x32xf32>
    %187 = vector.extract_strided_slice %186 {offsets = [0, 0], sizes = [1, 32], strides = [1, 1]} : vector<8x32xf32> to vector<1x32xf32>
    %c0_67 = arith.constant 0 : index
    %c192 = arith.constant 192 : index
    %188 = vector.load %arg7[%c0_67, %c192] : memref<32x256xf32, #tpu.memory_space<vmem>>, vector<32x32xf32>
    %189 = arith.truncf %187 : vector<1x32xf32> to vector<1x32xbf16>
    %190 = arith.truncf %188 : vector<32x32xf32> to vector<32x32xbf16>
    %cst_68 = arith.constant dense<0.000000e+00> : vector<1x32xf32>
    %191 = tpu.matmul %189, %190, %cst_68 {dimension_numbers = #tpu.dot_dimension_numbers<[1], [0], [0], [1], [0, 0, 1, 1], [], []>} : vector<1x32xbf16>, vector<32x32xbf16>, vector<1x32xf32> -> vector<1x32xf32>
    %c10 = arith.constant 10 : index
    %c0_69 = arith.constant 0 : index
    %192 = vector.load %arg9[%c10, %c0_69] : memref<13x96xf32, #tpu.memory_space<vmem>>, vector<1x32xf32>
    %193 = arith.addf %191, %192 : vector<1x32xf32>
    %194 = math.tanh %193 : vector<1x32xf32>
    %c0_70 = arith.constant 0 : index
    %c0_71 = arith.constant 0 : index
    %c0_72 = arith.constant 0 : index
    %195 = vector.load %arg4[%c0_70, %c0_71, %c0_72] : memref<1x1x16xf32, #tpu.memory_space<vmem>>, vector<1x1x16xf32>
    %196 = vector.shape_cast %195 : vector<1x1x16xf32> to vector<1x16xf32>
    %c64 = arith.constant 64 : index
    %c0_73 = arith.constant 0 : index
    %197 = vector.load %arg8[%c64, %c0_73] : memref<80x32xf32, #tpu.memory_space<vmem>>, vector<16x32xf32>
    %198 = arith.truncf %196 : vector<1x16xf32> to vector<1x16xbf16>
    %199 = arith.truncf %197 : vector<16x32xf32> to vector<16x32xbf16>
    %cst_74 = arith.constant dense<0.000000e+00> : vector<1x32xf32>
    %200 = tpu.matmul %198, %199, %cst_74 {dimension_numbers = #tpu.dot_dimension_numbers<[1], [0], [0], [1], [0, 0, 1, 1], [], []>} : vector<1x16xbf16>, vector<16x32xbf16>, vector<1x32xf32> -> vector<1x32xf32>
    %c11 = arith.constant 11 : index
    %c0_75 = arith.constant 0 : index
    %201 = vector.load %arg9[%c11, %c0_75] : memref<13x96xf32, #tpu.memory_space<vmem>>, vector<1x32xf32>
    %202 = arith.addf %200, %201 : vector<1x32xf32>
    %cst_76 = arith.constant 0.000000e+00 : f32
    %203 = vector.broadcast %cst_76 : f32 to vector<1x32xf32>
    %204 = arith.cmpf ogt, %202, %203 : vector<1x32xf32>
    %cst_77 = arith.constant 2.000000e-01 : f32
    %205 = vector.broadcast %cst_77 : f32 to vector<1x32xf32>
    %206 = arith.mulf %205, %202 : vector<1x32xf32>
    %207 = arith.select %204, %202, %206 : vector<1x32xi1>, vector<1x32xf32>
    %c0_78 = arith.constant 0 : index
    %c224 = arith.constant 224 : index
    %208 = vector.load %arg7[%c0_78, %c224] : memref<32x256xf32, #tpu.memory_space<vmem>>, vector<32x32xf32>
    %209 = arith.truncf %207 : vector<1x32xf32> to vector<1x32xbf16>
    %210 = arith.truncf %208 : vector<32x32xf32> to vector<32x32xbf16>
    %cst_79 = arith.constant dense<0.000000e+00> : vector<1x32xf32>
    %211 = tpu.matmul %209, %210, %cst_79 {dimension_numbers = #tpu.dot_dimension_numbers<[1], [0], [0], [1], [0, 0, 1, 1], [], []>} : vector<1x32xbf16>, vector<32x32xbf16>, vector<1x32xf32> -> vector<1x32xf32>
    %c12 = arith.constant 12 : index
    %c0_80 = arith.constant 0 : index
    %212 = vector.load %arg9[%c12, %c0_80] : memref<13x96xf32, #tpu.memory_space<vmem>>, vector<1x32xf32>
    %213 = arith.addf %211, %212 : vector<1x32xf32>
    %214 = vector.shape_cast %194 : vector<1x32xf32> to vector<1x1x32xf32>
    %c0_81 = arith.constant 0 : index
    %c0_82 = arith.constant 0 : index
    %c0_83 = arith.constant 0 : index
    %215 = vector.load %arg10[%c0_81, %c0_82, %c0_83] : memref<1x2x32xf32, #tpu.memory_space<vmem>>, vector<1x1x32xf32>
    tpu.vector_store %arg10[%c0_81, %c0_82, %c0_83], %214 {strides = array<i32>} : memref<1x2x32xf32, #tpu.memory_space<vmem>>, vector<1x1x32xf32>,
    %216 = vector.shape_cast %213 : vector<1x32xf32> to vector<1x1x32xf32>
    %c0_84 = arith.constant 0 : index
    %c1_85 = arith.constant 1 : index
    %c0_86 = arith.constant 0 : index
    %217 = vector.load %arg10[%c0_84, %c1_85, %c0_86] : memref<1x2x32xf32, #tpu.memory_space<vmem>>, vector<1x1x32xf32>
    tpu.vector_store %arg10[%c0_84, %c1_85, %c0_86], %216 {strides = array<i32>} : memref<1x2x32xf32, #tpu.memory_space<vmem>>, vector<1x1x32xf32>,
    return
  }
  func.func @transform_0(%arg0: i32) -> (i32, i32, i32) {
    %c0_i32 = arith.constant 0 : i32
    %c0_i32_0 = arith.constant 0 : i32
    %c0_i32_1 = arith.constant 0 : i32
    return %arg0, %c0_i32, %c0_i32_0 : i32, i32, i32
  }
  func.func @transform_1(%arg0: i32) -> (i32, i32, i32) {
    %c0_i32 = arith.constant 0 : i32
    %c0_i32_0 = arith.constant 0 : i32
    %c0_i32_1 = arith.constant 0 : i32
    return %arg0, %c0_i32, %c0_i32_0 : i32, i32, i32
  }
  func.func @transform_2(%arg0: i32) -> (i32, i32, i32) {
    %c0_i32 = arith.constant 0 : i32
    %c0_i32_0 = arith.constant 0 : i32
    %c0_i32_1 = arith.constant 0 : i32
    return %arg0, %c0_i32, %c0_i32_0 : i32, i32, i32
  }
  func.func @transform_3(%arg0: i32) -> (i32, i32, i32) {
    %c0_i32 = arith.constant 0 : i32
    %c0_i32_0 = arith.constant 0 : i32
    %c0_i32_1 = arith.constant 0 : i32
    return %arg0, %c0_i32, %c0_i32_0 : i32, i32, i32
  }
  func.func @transform_4(%arg0: i32) -> (i32, i32) {
    %c0_i32 = arith.constant 0 : i32
    %c0_i32_0 = arith.constant 0 : i32
    %c0_i32_1 = arith.constant 0 : i32
    return %c0_i32, %c0_i32_0 : i32, i32
  }
  func.func @transform_5(%arg0: i32) -> (i32, i32) {
    %c0_i32 = arith.constant 0 : i32
    %c0_i32_0 = arith.constant 0 : i32
    %c0_i32_1 = arith.constant 0 : i32
    return %c0_i32, %c0_i32_0 : i32, i32
  }
  func.func @transform_6(%arg0: i32) -> (i32, i32) {
    %c0_i32 = arith.constant 0 : i32
    %c0_i32_0 = arith.constant 0 : i32
    %c0_i32_1 = arith.constant 0 : i32
    return %c0_i32, %c0_i32_0 : i32, i32
  }
  func.func @transform_7(%arg0: i32) -> (i32, i32) {
    %c0_i32 = arith.constant 0 : i32
    %c0_i32_0 = arith.constant 0 : i32
    %c0_i32_1 = arith.constant 0 : i32
    return %c0_i32, %c0_i32_0 : i32, i32
  }
  func.func @transform_8(%arg0: i32) -> (i32, i32) {
    %c0_i32 = arith.constant 0 : i32
    %c0_i32_0 = arith.constant 0 : i32
    %c0_i32_1 = arith.constant 0 : i32
    return %c0_i32, %c0_i32_0 : i32, i32
  }
  func.func @transform_9(%arg0: i32) -> (i32, i32, i32) {
    %c0_i32 = arith.constant 0 : i32
    %c0_i32_0 = arith.constant 0 : i32
    %c0_i32_1 = arith.constant 0 : i32
    return %arg0, %c0_i32, %c0_i32_0 : i32, i32, i32
  }
}

</mosaic_0001>

<bundles_post_ra>
// kernel: gan_bert_forward.1
= control target key start
LH: loop header
LB: loop body
LE: loop exit
PB: predicated region body
PF: predicated region fallthrough
CT: control target
= control target key end

     0   :  { %s1542_s30 = smov 0   ;;  %s1825_s0 = inlined_call_operand.vmem [shape: s32[2,8,1], index: 0, kind: input, shape index: {}]   ;;  %s1826_s1 = inlined_call_operand.vmem [shape: s32[2,8,1], index: 1, kind: input, shape index: {}]   ;;  %s1827_s2 = inlined_call_operand.vmem [shape: f32[2,1,8], index: 2, kind: input, shape index: {}]   ;;  %s1828_s3 = inlined_call_operand.vmem [shape: f32[2,1,16], index: 3, kind: input, shape index: {}]   ;;  %s1829_s4 = inlined_call_operand.vmem [shape: f32[102,32], index: 4, kind: input, shape index: {}]   ;;  %s1830_s5 = inlined_call_operand.vmem [shape: f32[64,32], index: 5, kind: input, shape index: {}]   ;;  %s1831_s6 = inlined_call_operand.vmem [shape: f32[32,256], index: 6, kind: input, shape index: {}]   ;;  %s1832_s7 = inlined_call_operand.vmem [shape: f32[80,32], index: 7, kind: input, shape index: {}]   ;;  %s1833_s8 = inlined_call_operand.vmem [shape: f32[13,96], index: 8, kind: input, shape index: {}]   ;;  %s1834_s9 = inlined_call_operand.vmem [shape: f32[2,2,32], index: 9, kind: output, shape index: {}]  }
   0x1 LB: > { %s1266_s10 = sadd.s32 4294967295, %s1480_s30   ;;  %p1270_p0 = scmp.ge.s32.totalorder %s1480_s30, 1  ;;  %s1480_s30 = sphi %s1542_s30, %s19_s30  }
   0x2   : > { %p311_p1 = scmp.lt.s32.totalorder %s1480_s30, 3 }
   0x4   : > { %p312_p2 = pnand %p1270_p0, %p311_p1 }
   0x5   : > { %p355_p3 = scmp.lt.s32.totalorder (!%p312_p2), %s1266_s10, 1  ;;  %s1485_s22 = smov (!%p312_p2), 96  }
   0x6   : > { %315 = sbr.rel (%p312_p2) target bundleno = 3967 (0xf7f), region = 56  ;;  %s1486_s26 = smov (!%p312_p2), 64  }
   0x7   : > { %s1487_s27 = smov (!%p312_p2), 80   ;;  %s1488_s28 = smov (!%p312_p2), 112  }
   0x8   : > { %s1489_s29 = smov (!%p312_p2), 48   ;;  %s1490_s11 = smov (!%p312_p2), 32  }
   0x9   : > { %s1491_s12 = smov (!%p312_p2), 16  }
   0xb   : > { %v400_v0 = vld [vmem:[%s1829_s4 + $0x60] sm:$0x3f]  ;;  %vm416_vm0 = vcmask 1042432   ;;  %v1482_v1 = vmov 0   ;;  %v1483_v2 = vmov 0.0   ;;  %v398_v4 = vld [vmem:[%s1829_s4 + $0x50] sm:$0xff]  ;;  %v377_v26 = vlaneseq }
   0xc   : > { %1455 = vset.pattern.permute.xlu0 %v1482_v1  ;;  %1337 = vmatprep.subr.bf16.mxu0 %v1483_v2  ;;  %v410_v3 = vpack.c.bf16 %v400_v0, %v400_v0  ;;  %v399_v5 = vld [vmem:[%s1829_s4 + $0x58] sm:$0xff]  ;;  %s1836_s10 = smov (!%p355_p3, %s1266_s10), 1  ;;  %v396_v8 = vld [vmem:[%s1829_s4 + $0x40] sm:$0xff]  ;;  %v397_v9 = vld [vmem:[%s1829_s4 + $0x48] sm:$0xff]  ;;  %vm1484_vm1 = vmmov 0   ;;  %vm412_vm5 = vcmask 834560  }
   0xd   : > { %1355 = vmatprep.subr.bf16.mxu1 %v1483_v2  ;;  %s1271_s17 = sshll.u32 %s1836_s10, 3  ;;  %v409_v7 = vpack.c.bf16 %v399_v5, %v398_v4  ;;  %v408_v13 = vpack.c.bf16 %v397_v9, %v396_v8  ;;  %v394_v14 = vld [vmem:[%s1829_s4 + $0x30] sm:$0xff]  ;;  %v395_v15 = vld [vmem:[%s1829_s4 + $0x38] sm:$0xff]  ;;  %1351 = vmatprep.mubr.msk.bf16.mxu0 %vm1484_vm1, %v1483_v2  ;;  %v392_v17 = vld [vmem:[%s1829_s4 + $0x20] sm:$0xff]  ;;  %v378_v28 = vand.u32 127, %v377_v26  ;;  %vm462_vm6 = vcmask 261120   ;;  %s365_s25 = scalar_lea.vmem %s1827_s2, %s1836_s10 }
   0xe   : > { %v418_v6 = vsel %vm416_vm0, %v410_v3, 0  ;;  %s358_s20 = scalar_lea.vmem %s1825_s0, %s1271_s17  ;;  %s362_s23 = scalar_lea.vmem %s1826_s1, %s1271_s17  ;;  %v407_v16 = vpack.c.bf16 %v395_v15, %v394_v14  ;;  %1359 = vmatprep.mubr.msk.bf16.mxu1 %vm1484_vm1, %v1483_v2  ;;  %v393_v18 = vld [vmem:[%s1829_s4 + $0x28] sm:$0xff]  ;;  %v390_v20 = vld [vmem:[%s1829_s4 + $0x10] sm:$0xff]  ;;  %v391_v21 = vld [vmem:[%s1829_s4 + $0x18] sm:$0xff]  ;;  %vm555_vm7 = vcmask 130048   ;;  %v548_v8 = vshrl.u32 %v377_v26, 7 }
   0xf   : > { %1338 = vmatpush3.bf16.msra.mxu0 %v418_v6  ;;  %v374_v10 = vld [vmem:[%s358_s20] sm:$0xff]  ;;  %v406_v19 = vpack.c.bf16 %v393_v18, %v392_v17  ;;  %v405_v22 = vpack.c.bf16 %v391_v21, %v390_v20  ;;  %v389_v24 = vld [vmem:[%s1829_s4 + $0x8] sm:$0xff]  ;;  %v490_v45 = vld [vmem:[%s1831_s6 + $0x30] sm:$0xff]  ;;  %vm602_vm8 = vcmask 64512   ;;  %vm620_vm9 = vcmask 1043456   ;;  %s368_s21 = scalar_lea.vmem %s1828_s3, %s1836_s10 }
  0x10   : > { %1339 = vmatprep.subr.bf16.mxu0 %v1483_v2  ;;  %v375_v11 = vld [vmem:[%s362_s23] sm:$0xff]  ;;  %380 = vperm.xlu0 %1455, %v374_v10   ;;  %v488_v48 = vld [vmem:[%s1831_s6 + $0x10] sm:$0xff]  ;;  %v549_v10 = vsub.s32 0, %v548_v8  ;;  %vm779_vm10 = vcmask 261248   ;;  %vm953_vm11 = vcmask 523264   ;;  %vm1180_vm13 = vcmask 253952  }
  0x11   : > { %v376_v12 = vadd.s32 100, %v375_v11  ;;  %v388_v23 = vld [vmem:[%s1829_s4] sm:$0xff] }
  0x12   : > { %v404_v25 = vpack.c.bf16 %v389_v24, %v388_v23  ;;  %v411_v32 = vld [vmem:[%s1830_s5] sm:$0xff] }
  0x13   : > { %1340 = vmatpush3.bf16.msra.mxu0 %v409_v7  ;;  %v489_v44 = vld [vmem:[%s1831_s6 + $0x20] sm:$0xff] }
  0x14   : > { %1341 = vmatprep.subr.bf16.mxu0 %v1483_v2  ;;  %384 = vperm.xlu0 %1455, %v376_v12   ;;  %v487_v46 = vld [vmem:[%s1831_s6] sm:$0xff]  ;;  %v1629_v47 = vpack.c.bf16 %v490_v45, %v489_v44 }
  0x15   : > { %v1635_v49 = vpack.c.bf16 %v488_v48, %v487_v46  ;;  %v1276_v54 = vld [vmem:[%s1833_s8] ss:$0 sm:$0xff]  ;;  %v1277_v56 = vld [vmem:[%s1833_s8 + $0x1] ss:$0 sm:$0xff]  ;;  %v1278_v60 = vld [vmem:[%s1833_s8 + $0x2] ss:$0 sm:$0xff] }
  0x16   : > { %1356 = vmatpush3.bf16.msra.mxu1 %v1629_v47  ;;  %v543_v6 = vld [vmem:[%s365_s25] sm:$0x1] }
  0x17   : > { %1342 = vmatpush3.bf16.msra.mxu0 %v408_v13  ;;  %1357 = vmatprep.subr.bf16.mxu1 %v1483_v2  ;;  %v544_v7 = vsub.f32 1.0, %v543_v6 }
  0x18   : > { %1343 = vmatprep.subr.bf16.mxu0 %v1483_v2 }
  0x19   : > { %v545_v9 = vmul.f32 -10000.0, %v544_v7 }
  0x1a   : > { %1358 = vmatpush3.bf16.msra.mxu1 %v1635_v49 }
  0x1b   : > { %1344 = vmatpush3.bf16.msra.mxu0 %v407_v16  ;;  %1363 = vmatprep.subr.bf16.mxu1 %v1483_v2  ;;  %v550_v11 = vrot.slane %v545_v9, %v549_v10 }
  0x1c   : > { %1345 = vmatprep.subr.bf16.mxu0 %v1483_v2 }
  0x1f   : > { %1346 = vmatpush3.bf16.msra.mxu0 %v406_v19 }
  0x20   : > { %1347 = vmatprep.subr.bf16.mxu0 %v1483_v2 }
  0x23   : > { %1348 = vmatpush3.bf16.msra.mxu0 %v405_v22 }
  0x24   : > { %1349 = vmatprep.subr.bf16.mxu0 %v1483_v2 }
  0x27   : > { %1350 = vmatpush3.bf16.msra.mxu0 %v404_v25 }
  0x28   : > { %1381 = vmatprep.subr.bf16.mxu0 %v1483_v2 }
  0x8b   : > { %v381_v27 = vpop.permute.xlu0 %380 }
  0x8c   : > { %vm382_vm2 = vcmp.eq.s32.totalorder %v378_v28, %v381_v27 }
  0x8f   : > { %v385_v29 = vpop.permute.xlu0 %384 }
  0x90   : > { %vm386_vm3 = vcmp.eq.s32.totalorder %v378_v28, %v385_v29 }
  0x91   : > { %vm387_vm4 = vmor %vm382_vm2, %vm386_vm3 }
  0x92   : > { %v1274_v30 = vsel %vm387_vm4, 1.0, %v1483_v2 }
  0x93   : > { %v403_v31 = vpack.c.bf16 %v1274_v30, %v1274_v30 }
  0x95   : > { %1352 = vmatmul.mubr.msk.bf16.vlgmr.msra.gmra.mxu0 %vm412_vm5, %v403_v31 }
  0x96   : > { %1383 = vmatprep.mubr.msk.bf16.mxu0 %vm1484_vm1, %v1483_v2 }
 0x155   : > { %v454_v33 = vpop.f32.mrf.mxu0 }
 0x156   : > { %v455_v34 = vadd.f32 %v454_v33, %v411_v32 }
 0x157   : > { %v1353_v35 = vpop.f32.mrf.mxu0 }
 0x158   : > { %v463_v36 = vsel %vm462_vm6, %v455_v34, 0.0 }
 0x159   : > { %464 = vadd.xlane.f32.xlu1 %v463_v36  ;;  %v457_v37 = vpop.f32.mrf.mxu0 }
 0x15b   : > { %v1354_v38 = vpop.f32.mrf.mxu0 }
 0x1e2   : > { %v465_v39 = vpop.xlane.xlu1 %464 }
 0x1e3   : > { %v467_v40 = vmul.f32 0.03125, %v465_v39 }
 0x1e5   : > { %v468_v41 = vsub.f32 %v455_v34, %v467_v40 }
 0x1e7   : > { %v469_v42 = vmul.f32 %v468_v41, %v468_v41 }
 0x1e9   : > { %v470_v43 = vsel %vm462_vm6, %v469_v42, 0.0 }
 0x1ea   : > { %471 = vadd.xlane.f32.xlu1 %v470_v43 }
 0x273   : > { %v472_v50 = vpop.xlane.xlu1 %471 }
 0x274   : > { %v473_v51 = vmul.f32 0.03125, %v472_v50 }
 0x276   : > { %v474_v52 = vadd.f32 1e-12, %v473_v51 }
 0x278   : > { %1456 = vrsqrt.f32 %v474_v52 }
 0x285   : > { %v1457_v53 = vpop.eup %1456 }
 0x286   : > { %v476_v55 = vmul.f32 %v1457_v53, %v468_v41 }
 0x288   : > { %v481_v57 = vmul.f32 %v1276_v54, %v476_v55 }
 0x28a   : > { %v1646_v58 = vadd.f32 %v1277_v56, %v481_v57 }
 0x28c   : > { %v491_v59 = vpack.c.bf16 %v1646_v58, %v1646_v58 }
 0x28e   : > { %1360 = vmatmul.mubr.msk.bf16.vlgmr.msra.gmra.mxu1 %vm462_vm6, %v491_v59 }
 0x28f   : > { %1365 = vmatprep.mubr.msk.bf16.mxu1 %vm1484_vm1, %v1483_v2 }
 0x34e   : > { %v536_v61 = vpop.f32.mrf.mxu1 }
 0x34f   : > { %v537_v62 = vadd.f32 %v1278_v60, %v536_v61 }
 0x350   : > { %v1361_v63 = vpop.f32.mrf.mxu1 }
 0x351   : > { %v1656_v0 = vpack.c.bf16 %v537_v62, %v537_v62 }
 0x352   : > { %v539_v1 = vpop.f32.mrf.mxu1 }
 0x353   : > { %553 = vrot.lane.b32.xlu0 %v1656_v0, %s1485_s22 }
 0x354   : > { %v1362_v3 = vpop.f32.mrf.mxu1 }
 0x3c5   : > { %v554_v4 = vpop.permute.xlu0 %553 }
 0x3c6   : > { %v560_v5 = vsel %vm555_vm7, %v554_v4, 0 }
 0x3c7   : > { %1364 = vmatpush3.bf16.xpose.msra.mxu1 %v560_v5 }
 0x3c8   : > { %1369 = vmatprep.subr.bf16.mxu1 %v1483_v2 }
 0x3ce   : > { %1366 = vmatmul.mubr.msk.bf16.vlgmr.msra.gmra.mxu1 %vm555_vm7, %v1656_v0 }
 0x3cf   : > { %1371 = vmatprep.mubr.msk.bf16.mxu1 %vm1484_vm1, %v1483_v2 }
 0x48e   : > { %v596_v12 = vpop.f32.mrf.mxu1 }
 0x48f   : > { %v597_v13 = vadd.f32 %v596_v12, %v550_v11 }
 0x490   : > { %v1367_v14 = vpop.f32.mrf.mxu1 }
 0x491   : > { %v603_v15 = vsel %vm602_vm8, %v597_v13, -inf }
 0x492   : > { %604 = vmax.xlane.f32.xlu1 %v603_v15  ;;  %v599_v16 = vpop.f32.mrf.mxu1  ;;  %v871_v15 = vld [vmem:[%s1831_s6 + $0x8] sm:$0xff] }
 0x493   : > { %v872_v16 = vld [vmem:[%s1831_s6 + $0x18] sm:$0xff] }
 0x494   : > { %v1368_v17 = vpop.f32.mrf.mxu1 }
 0x495   : > { %v1724_v17 = vpack.c.bf16 %v872_v16, %v871_v15  ;;  %v1078_v16 = vld [vmem:[%s1832_s7 + $0x40] sm:$0xff] }
 0x4a3   : > { %615 = vrot.lane.b32.xlu1 %v1656_v0, %s1486_s26 }
 0x4a7   : > { %667 = vrot.lane.b32.xlu1 %v1656_v0, %s1487_s27  ;;  %s1273_s27 = sshll.u32 %s1836_s10, 1 }
 0x4ab   : > { %665 = vrot.lane.b32.xlu1 %v1656_v0, %s1488_s28 }
 0x51b   : > { %v605_v18 = vpop.xlane.xlu1 %604 }
 0x51c   : > { %v606_v19 = vsub.f32 %v597_v13, %v605_v18  ;;  %v873_v13 = vld [vmem:[%s1831_s6 + $0x28] sm:$0xff] }
 0x51e   : > { %v607_v20 = vmul.f32 1.442695, %v606_v19 }
 0x51f   : > { %v616_v21 = vpop.permute.xlu1 %615 }
 0x520   : > { %1458 = vpow2.f32 %v607_v20  ;;  %v622_v22 = vsel %vm620_vm9, %v616_v21, 0 }
 0x521   : > { %1370 = vmatpush3.bf16.msra.mxu1 %v622_v22  ;;  %v1286_v22 = vld [vmem:[%s1833_s8 + $0x4] ss:$0 sm:$0xff] }
 0x522   : > { %1375 = vmatprep.subr.bf16.mxu1 %v1483_v2 }
 0x523   : > { %v668_v28 = vpop.permute.xlu1 %667 }
 0x524   : > { %v673_v30 = vsel %vm555_vm7, %v668_v28, 0  ;;  %v941_v28 = vld [vmem:[%s1832_s7 + $0x30] sm:$0xff] }
 0x527   : > { %v666_v31 = vpop.permute.xlu1 %665 }
 0x52d   : > { %v1459_v23 = vpop.eup %1458 }
 0x52e   : > { %v609_v24 = vsel %vm602_vm8, %v1459_v23, 0.0 }
 0x52f   : > { %610 = vadd.xlane.f32.xlu0 %v609_v24  ;;  %v1287_v24 = vld [vmem:[%s1833_s8 + $0x5] ss:$0 sm:$0xff] }
 0x5b8   : > { %v611_v25 = vpop.xlane.xlu0 %610 }
 0x5b9   : > { %1460 = vrcp.f32 %v611_v25 }
 0x5c6   : > { %v1461_v26 = vpop.eup %1460 }
 0x5c7   : > { %v613_v27 = vmul.f32 %v1461_v26, %v1459_v23 }
 0x5c9   : > { %v614_v29 = vpack.c.bf16 %v613_v27, %v613_v27 }
 0x5cb   : > { %1372 = vmatmul.mubr.msk.bf16.vlgmr.msra.gmra.mxu1 %vm602_vm8, %v614_v29  ;;  %v942_v29 = vld [vmem:[%s1832_s7 + $0x38] sm:$0xff] }
 0x5cc   : > { %1376 = vmatpush3.bf16.xpose.msra.mxu1 %v673_v30  ;;  %1377 = vmatprep.mubr.msk.bf16.mxu1 %vm1484_vm1, %v1483_v2  ;;  %v947_v30 = vpack.c.bf16 %v942_v29, %v941_v28 }
 0x5cd   : > { %1387 = vmatprep.subr.bf16.mxu1 %v1483_v2 }
 0x5d3   : > { %1378 = vmatmul.mubr.msk.bf16.vlgmr.msra.gmra.mxu1 %vm555_vm7, %v666_v31  ;;  %v939_v31 = vld [vmem:[%s1832_s7 + $0x20] sm:$0xff] }
 0x5d4   : > { %1391 = vmatprep.mubr.msk.bf16.mxu1 %vm1484_vm1, %v1483_v2 }
 0x68b   : > { %v658_v32 = vpop.f32.mrf.mxu1 }
 0x68c   : > { %664 = vst.msk [vmem:[#allocation2] sm:$0xff] %vm555_vm7, %v658_v32  ;;  %v940_v32 = vld [vmem:[%s1832_s7 + $0x28] sm:$0xff] }
 0x68d   : > { %v1373_v33 = vpop.f32.mrf.mxu1 }
 0x68e   : > { %v946_v33 = vpack.c.bf16 %v940_v32, %v939_v31  ;;  %v1082_v31 = vld [vmem:[%s1833_s8 + $0xb] sm:$0x1] }
 0x68f   : > { %v661_v34 = vpop.f32.mrf.mxu1 }
 0x690   : > { %v937_v34 = vld [vmem:[%s1832_s7 + $0x10] sm:$0xff] }
 0x691   : > { %v1374_v35 = vpop.f32.mrf.mxu1 }
 0x692   : > { %v938_v35 = vld [vmem:[%s1832_s7 + $0x18] sm:$0xff] }
 0x693   : > { %v709_v36 = vpop.f32.mrf.mxu1 }
 0x694   : > { %v710_v37 = vadd.f32 %v709_v36, %v550_v11  ;;  %v945_v36 = vpack.c.bf16 %v938_v35, %v937_v34 }
 0x695   : > { %v1379_v38 = vpop.f32.mrf.mxu1 }
 0x696   : > { %v715_v39 = vsel %vm602_vm8, %v710_v37, -inf  ;;  %v936_v38 = vld [vmem:[%s1832_s7 + $0x8] sm:$0xff] }
 0x697   : > { %716 = vmax.xlane.f32.xlu1 %v715_v39  ;;  %v712_v40 = vpop.f32.mrf.mxu1 }
 0x698   : > { %v1288_v40 = vld [vmem:[%s1833_s8 + $0x6] ss:$0 sm:$0xff] }
 0x699   : > { %v1380_v41 = vpop.f32.mrf.mxu1 }
 0x6a8   : > { %796 = vrot.lane.b32.xlu1 %v1635_v49, %s1490_s11 }
 0x720   : > { %v717_v42 = vpop.xlane.xlu1 %716 }
 0x721   : > { %v718_v43 = vsub.f32 %v710_v37, %v717_v42  ;;  %v935_v37 = vld [vmem:[%s1832_s7] sm:$0xff] }
 0x722   : > { %v944_v39 = vpack.c.bf16 %v936_v38, %v935_v37 }
 0x723   : > { %v719_v44 = vmul.f32 1.442695, %v718_v43 }
 0x724   : > { %v797_v62 = vpop.permute.xlu1 %796 }
 0x725   : > { %1462 = vpow2.f32 %v719_v44 }
 0x732   : > { %v1463_v45 = vpop.eup %1462 }
 0x733   : > { %v721_v46 = vsel %vm602_vm8, %v1463_v45, 0.0 }
 0x734   : > { %722 = vadd.xlane.f32.xlu0 %v721_v46 }
 0x74a   : > { %727 = vrot.lane.b32.xlu0 %v1656_v0, %s1489_s29 }
 0x7bd   : > { %v723_v48 = vpop.xlane.xlu0 %722 }
 0x7be   : > { %1464 = vrcp.f32 %v723_v48 }
 0x7c1   : > { %v728_v50 = vpop.permute.xlu0 %727 }
 0x7c2   : > { %v733_v51 = vsel %vm620_vm9, %v728_v50, 0 }
 0x7c3   : > { %1382 = vmatpush3.bf16.msra.mxu0 %v733_v51 }
 0x7c4   : > { %1395 = vmatprep.subr.bf16.mxu0 %v1483_v2 }
 0x7cb   : > { %v1465_v52 = vpop.eup %1464 }
 0x7cc   : > { %v725_v53 = vmul.f32 %v1465_v52, %v1463_v45 }
 0x7ce   : > { %v726_v54 = vpack.c.bf16 %v725_v53, %v725_v53 }
 0x7d0   : > { %1384 = vmatmul.mubr.msk.bf16.vlgmr.msra.gmra.mxu0 %vm602_vm8, %v726_v54 }
 0x7d1   : > { %1399 = vmatprep.mubr.msk.bf16.mxu0 %vm1484_vm1, %v1483_v2 }
 0x890   : > { %v769_v55 = vpop.f32.mrf.mxu0 }
 0x891   : > { %776 = vrot.lane.b32.xlu0 %v769_v55, %s1491_s12  ;;  %s372_s12 = scalar_lea.vmem %s1834_s9, %s1273_s27 }
 0x892   : > { %v1385_v56 = vpop.f32.mrf.mxu0 }
 0x894   : > { %v772_v57 = vpop.f32.mrf.mxu0 }
 0x895   : > { %798 = vrot.lane.b32.xlu0 %v1629_v47, %s1490_s11  ;;  %v1284_v47 = vld [vmem:[%s1833_s8 + $0x3] ss:$0 sm:$0xff] }
 0x896   : > { %v1386_v59 = vpop.f32.mrf.mxu0 }
 0x897   : > { %v1290_v59 = vld [vmem:[%s1833_s8 + $0x7] ss:$0 sm:$0xff] }
 0x903   : > { %v777_v60 = vpop.permute.xlu0 %776 }
 0x904   : > { %780 = vst.msk [vmem:[#allocation2] sm:$0xff] %vm779_vm10, %v777_v60 }
 0x907   : > { %v799_v61 = vpop.permute.xlu0 %798 }
 0x908   : > { %1388 = vmatpush3.bf16.msra.mxu1 %v799_v61 }
 0x909   : > { %1389 = vmatprep.subr.bf16.mxu1 %v1483_v2 }
 0x90b   : > { %v781_v63 = vld [vmem:[#allocation2] sm:$0xff] }
 0x90c   : > { %1390 = vmatpush3.bf16.msra.mxu1 %v797_v62  ;;  %v786_v49 = vpack.c.bf16 %v781_v63, %v781_v63 }
 0x90d   : > { %1403 = vmatprep.subr.bf16.mxu1 %v1483_v2 }
 0x90f   : > { %1392 = vmatmul.mubr.msk.bf16.vlgmr.msra.gmra.mxu1 %vm462_vm6, %v786_v49 }
 0x910   : > { %1411 = vmatprep.mubr.msk.bf16.mxu1 %vm1484_vm1, %v1483_v2  ;;  %1404 = vmatpush3.bf16.msra.mxu1 %v947_v30 }
 0x911   : > { %1405 = vmatprep.subr.bf16.mxu1 %v1483_v2 }
 0x914   : > { %1406 = vmatpush3.bf16.msra.mxu1 %v946_v33 }
 0x915   : > { %1407 = vmatprep.subr.bf16.mxu1 %v1483_v2 }
 0x918   : > { %1408 = vmatpush3.bf16.msra.mxu1 %v945_v36 }
 0x919   : > { %1409 = vmatprep.subr.bf16.mxu1 %v1483_v2 }
 0x91c   : > { %1410 = vmatpush3.bf16.msra.mxu1 %v944_v39 }
 0x91d   : > { %1429 = vmatprep.subr.bf16.mxu1 %v1483_v2 }
 0x9cf   : > { %v839_v0 = vpop.f32.mrf.mxu1 }
 0x9d0   : > { %v840_v1 = vadd.f32 %v1284_v47, %v839_v0 }
 0x9d1   : > { %v1393_v3 = vpop.f32.mrf.mxu1 }
 0x9d2   : > { %v845_v4 = vadd.f32 %v840_v1, %v1646_v58  ;;  %v874_v58 = vld [vmem:[%s1831_s6 + $0x38] sm:$0xff] }
 0x9d3   : > { %v842_v5 = vpop.f32.mrf.mxu1  ;;  %v1716_v14 = vpack.c.bf16 %v874_v58, %v873_v13  ;;  %v1292_v13 = vld [vmem:[%s1833_s8 + $0x8] ss:$0 sm:$0xff] }
 0x9d4   : > { %v848_v6 = vsel %vm462_vm6, %v845_v4, 0.0 }
 0x9d5   : > { %849 = vadd.xlane.f32.xlu0 %v848_v6  ;;  %v1394_v7 = vpop.f32.mrf.mxu1  ;;  %1396 = vmatpush3.bf16.msra.mxu0 %v1716_v14 }
 0x9d6   : > { %1397 = vmatprep.subr.bf16.mxu0 %v1483_v2 }
 0x9d9   : > { %1398 = vmatpush3.bf16.msra.mxu0 %v1724_v17 }
 0x9da   : > { %1415 = vmatprep.subr.bf16.mxu0 %v1483_v2 }
 0xa5e   : > { %v850_v8 = vpop.xlane.xlu0 %849 }
 0xa5f   : > { %v851_v9 = vmul.f32 0.03125, %v850_v8 }
 0xa61   : > { %v852_v10 = vsub.f32 %v845_v4, %v851_v9 }
 0xa63   : > { %v853_v11 = vmul.f32 %v852_v10, %v852_v10 }
 0xa65   : > { %v854_v12 = vsel %vm462_vm6, %v853_v11, 0.0 }
 0xa66   : > { %855 = vadd.xlane.f32.xlu1 %v854_v12 }
 0xa77   : > { %1027 = vrot.lane.b32.xlu1 %v1724_v17, %s1486_s26 }
 0xaef   : > { %v856_v18 = vpop.xlane.xlu1 %855 }
 0xaf0   : > { %v857_v19 = vmul.f32 0.03125, %v856_v18 }
 0xaf2   : > { %v858_v20 = vadd.f32 1e-12, %v857_v19 }
 0xaf3   : > { %v1028_v11 = vpop.permute.xlu1 %1027 }
 0xaf4   : > { %1466 = vrsqrt.f32 %v858_v20 }
 0xb01   : > { %v1467_v21 = vpop.eup %1466 }
 0xb02   : > { %v860_v23 = vmul.f32 %v1467_v21, %v852_v10  ;;  %v1077_v21 = vld [vmem:[%s368_s21] sm:$0x1] }
 0xb04   : > { %v865_v25 = vmul.f32 %v1286_v22, %v860_v23  ;;  %v1080_v22 = vpack.c.bf16 %v1077_v21, %v1077_v21 }
 0xb06   : > { %v870_v26 = vadd.f32 %v1287_v24, %v865_v25  ;;  %v1024_v25 = vld [vmem:[%s1833_s8 + $0xa] sm:$0x1] }
 0xb08   : > { %v875_v27 = vpack.c.bf16 %v870_v26, %v870_v26 }
 0xb0a   : > { %1400 = vmatmul.mubr.msk.bf16.vlgmr.msra.gmra.mxu0 %vm462_vm6, %v875_v27 }
 0xb0b   : > { %1419 = vmatprep.mubr.msk.bf16.mxu0 %vm1484_vm1, %v1483_v2 }
 0xbca   : > { %v920_v41 = vpop.f32.mrf.mxu0 }
 0xbcb   : > { %v921_v42 = vadd.f32 %v1288_v40, %v920_v41  ;;  %v1130_v40 = vld [vmem:[%s1833_s8 + $0xc] sm:$0x1] }
 0xbcc   : > { %v1401_v43 = vpop.f32.mrf.mxu0 }
 0xbcd   : > { %v926_v44 = vmul.f32 %v921_v42, %v921_v42 }
 0xbce   : > { %v923_v45 = vpop.f32.mrf.mxu0 }
 0xbcf   : > { %v927_v46 = vmul.f32 %v926_v44, %v921_v42 }
 0xbd0   : > { %v1402_v48 = vpop.f32.mrf.mxu0 }
 0xbd1   : > { %v928_v50 = vmul.f32 0.044715, %v927_v46 }
 0xbd3   : > { %v929_v51 = vadd.f32 %v928_v50, %v921_v42 }
 0xbd5   : > { %v930_v52 = vmul.f32 0.7978846, %v929_v51 }
 0xbd7   : > { %1468 = vtanh.f32 %v930_v52 }
 0xbe4   : > { %v1469_v53 = vpop.eup %1468 }
 0xbe5   : > { %v932_v54 = vadd.f32 1.0, %v1469_v53 }
 0xbe7   : > { %v933_v55 = vmul.f32 0.5, %v932_v54 }
 0xbe9   : > { %v934_v56 = vmul.f32 %v933_v55, %v921_v42 }
 0xbeb   : > { %v943_v57 = vpack.c.bf16 %v934_v56, %v934_v56 }
 0xbed   : > { %1412 = vmatmul.mubr.msk.bf16.vlgmr.msra.gmra.mxu1 %vm953_vm11, %v943_v57 }
 0xbee   : > { %1433 = vmatprep.mubr.msk.bf16.mxu1 %vm1484_vm1, %v1483_v2 }
 0xcad   : > { %v991_v60 = vpop.f32.mrf.mxu1 }
 0xcae   : > { %v992_v61 = vadd.f32 %v1290_v59, %v991_v60 }
 0xcaf   : > { %v1413_v62 = vpop.f32.mrf.mxu1 }
 0xcb0   : > { %v997_v63 = vadd.f32 %v992_v61, %v870_v26 }
 0xcb1   : > { %v994_v49 = vpop.f32.mrf.mxu1 }
 0xcb2   : > { %v1000_v47 = vsel %vm462_vm6, %v997_v63, 0.0 }
 0xcb3   : > { %1001 = vadd.xlane.f32.xlu0 %v1000_v47  ;;  %v1414_v0 = vpop.f32.mrf.mxu1 }
 0xd3c   : > { %v1002_v1 = vpop.xlane.xlu0 %1001 }
 0xd3d   : > { %v1003_v3 = vmul.f32 0.03125, %v1002_v1 }
 0xd3f   : > { %v1004_v4 = vsub.f32 %v997_v63, %v1003_v3 }
 0xd41   : > { %v1005_v5 = vmul.f32 %v1004_v4, %v1004_v4 }
 0xd43   : > { %v1006_v6 = vsel %vm462_vm6, %v1005_v5, 0.0 }
 0xd44   : > { %1007 = vadd.xlane.f32.xlu0 %v1006_v6 }
 0xd5a   : > { %1029 = vrot.lane.b32.xlu0 %v1716_v14, %s1486_s26 }
 0xd5e   : > { %1133 = vrot.lane.b32.xlu0 %v1716_v14, %s1490_s11  ;;  %v1293_v14 = vld [vmem:[%s1833_s8 + $0x9] ss:$0 sm:$0xff] }
 0xd62   : > { %1131 = vrot.lane.b32.xlu0 %v1724_v17, %s1490_s11  ;;  %v1079_v17 = vld [vmem:[%s1832_s7 + $0x48] sm:$0xff] }
 0xd63   : > { %v1081_v19 = vpack.c.bf16 %v1079_v17, %v1078_v16 }
 0xdcd   : > { %v1008_v7 = vpop.xlane.xlu0 %1007 }
 0xdce   : > { %v1009_v8 = vmul.f32 0.03125, %v1008_v7 }
 0xdd0   : > { %v1010_v9 = vadd.f32 1e-12, %v1009_v8 }
 0xdd1   : > { %v1030_v10 = vpop.permute.xlu0 %1029 }
 0xdd2   : > { %1470 = vrsqrt.f32 %v1010_v9  ;;  %1416 = vmatpush3.bf16.msra.mxu0 %v1030_v10 }
 0xdd3   : > { %1417 = vmatprep.subr.bf16.mxu0 %v1483_v2 }
 0xdd5   : > { %v1134_v23 = vpop.permute.xlu0 %1133 }
 0xdd6   : > { %1418 = vmatpush3.bf16.msra.mxu0 %v1028_v11  ;;  %1430 = vmatpush3.bf16.msra.mxu1 %v1134_v23 }
 0xdd7   : > { %1423 = vmatprep.subr.bf16.mxu0 %v1483_v2  ;;  %1431 = vmatprep.subr.bf16.mxu1 %v1483_v2 }
 0xdd9   : > { %v1132_v24 = vpop.permute.xlu0 %1131 }
 0xdda   : > { %1432 = vmatpush3.bf16.msra.mxu1 %v1132_v24 }
 0xddf   : > { %v1471_v12 = vpop.eup %1470 }
 0xde0   : > { %v1012_v58 = vmul.f32 %v1471_v12, %v1004_v4 }
 0xde2   : > { %v1017_v15 = vmul.f32 %v1292_v13, %v1012_v58 }
 0xde4   : > { %v1022_v18 = vadd.f32 %v1293_v14, %v1017_v15 }
 0xde6   : > { %v1023_v20 = vpack.c.bf16 %v1022_v18, %v1022_v18 }
 0xde8   : > { %1420 = vmatmul.mubr.msk.bf16.vlgmr.msra.gmra.mxu0 %vm462_vm6, %v1023_v20 }
 0xde9   : > { %1424 = vmatpush3.bf16.msra.mxu0 %v1081_v19  ;;  %1425 = vmatprep.mubr.msk.bf16.mxu0 %vm1484_vm1, %v1483_v2 }
 0xdf0   : > { %1426 = vmatmul.mubr.msk.bf16.vlgmr.msra.gmra.mxu0 %vm555_vm7, %v1080_v22 }
 0xea8   : > { %v1070_v26 = vpop.f32.mrf.mxu0 }
 0xea9   : > { %v1071_v27 = vadd.f32 %v1070_v26, %v1024_v25 }
 0xeaa   : > { %v1421_v28 = vpop.f32.mrf.mxu0 }
 0xeab   : > { %1472 = vtanh.f32 %v1071_v27 }
 0xeac   : > { %v1073_v29 = vpop.f32.mrf.mxu0 }
 0xeae   : > { %v1422_v30 = vpop.f32.mrf.mxu0 }
 0xeb0   : > { %v1120_v32 = vpop.f32.mrf.mxu0 }
 0xeb1   : > { %v1121_v33 = vadd.f32 %v1120_v32, %v1082_v31 }
 0xeb2   : > { %v1427_v2 = vpop.f32.mrf.mxu0 }
 0xeb3   : > { %vm1126_vm12 = vcmp.gt.f32.partialorder %v1121_v33, 0.0  ;;  %v1127_v34 = vmul.f32 0.2, %v1121_v33 }
 0xeb4   : > { %v1123_v35 = vpop.f32.mrf.mxu0 }
 0xeb5   : > { %v1128_v36 = vsel %vm1126_vm12, %v1121_v33, %v1127_v34 }
 0xeb6   : > { %v1129_v37 = vpack.c.bf16 %v1128_v36, %v1128_v36  ;;  %v1428_v38 = vpop.f32.mrf.mxu0 }
 0xeb8   : > { %v1473_v39 = vpop.eup %1472  ;;  %1434 = vmatmul.mubr.msk.bf16.vlgmr.msra.gmra.mxu1 %vm462_vm6, %v1129_v37 }
 0xeb9   : > { %1181 = vst.msk [vmem:[%s372_s12] sm:$0x1] %vm1180_vm13, %v1473_v39 }
 0xf78   : > { %v1174_v41 = vpop.f32.mrf.mxu1 }
 0xf79   : > { %v1175_v42 = vadd.f32 %v1174_v41, %v1130_v40 }
 0xf7a   : > { %v1435_v43 = vpop.f32.mrf.mxu1 }
 0xf7b   : > { %1182 = vst.msk [vmem:[%s372_s12 + $0x1] sm:$0x1] %vm1180_vm13, %v1175_v42 }
 0xf7c   : > { %v1177_v44 = vpop.f32.mrf.mxu1 }
 0xf7e   : > { %v1436_v45 = vpop.f32.mrf.mxu1 }
 0xf7f PF: > { %s19_s30 = sadd.s32 1, %s1480_s30  }
 0xf80   : > { %p16_p4 = scmp.ge.s32.totalorder %s19_s30, 4  }
 0xf82   :  { %18 = sbr.rel (!%p16_p4) target bundleno = 1 (0x1), region = 95 }

</bundles_post_ra>
